<compile_context>
chip_gen: v6e
topology: v6e:2x2x1
jax: 0.10.0
libtpu: 0.0.40
codegen_flags: <defaults>
</compile_context>

<pallas_src>
import functools
import operator

import jax
import jax.numpy as jnp
from jax.experimental import pallas as pl
from jax.experimental.pallas import tpu as pltpu


class Distribution:
    """Minimal stand-in: probs [B, N] + numeric symbols [N] (shared over batch)."""

    def __init__(self, probs, symbols):
        self.probs = probs
        self.symbols = symbols


def _prod(xs):
    return functools.reduce(operator.mul, xs, 1)


def _round_up(x, m):
    return (x + m - 1) // m * m


def _make_kernel(head_meta):
    """head_meta: tuple of (col_offset, size, head_stride) per head distribution."""

    def kernel(hp_ref, hs_ref, tp_ref, ts_ref, op_ref, os_ref):
        B, HB, T = op_ref.shape
        # First head row handled by this grid step (block-aligned).
        base = pl.multiple_of(pl.program_id(0) * HB, HB)

        # Trailing (periodic) pattern of the Cartesian product — constant
        # across the grid, fully VMEM resident.
        tp = tp_ref[...].astype(jnp.float32)   # [B, 1, T]
        ts = ts_ref[...]                        # [1, 1, T] float32

        head_p = None   # [B, HB, 1]
        head_s = None   # [1, HB, 1]

        for off, n, st in head_meta:
            if st % HB == 0:
                # Index of this distribution is constant within the block:
                # single scalar column pick, folded straight into the tail.
                col = (base // st) % n
                tp = tp * hp_ref[:, :, pl.ds(off + col, 1)].astype(jnp.float32)
                ts = jnp.maximum(ts, hs_ref[:, :, pl.ds(off + col, 1)])
            else:
                # Per-block-row one-hot gather (cost independent of T; no
                # unrolled select chains, reduce goes to the XLU slot).
                pj = hp_ref[:, :, off:off + n].astype(jnp.float32)   # [B, 1, n]
                sj = hs_ref[:, :, off:off + n]                       # [1, 1, n]
                rows = jax.lax.broadcasted_iota(jnp.int32, (1, HB, n), 1) + base
                cols = jax.lax.broadcasted_iota(jnp.int32, (1, HB, n), 2)
                idx = rows % n if st == 1 else (rows // st) % n
                onehot = (cols == idx).astype(jnp.float32)           # [1, HB, n]
                cp = jnp.sum(pj * onehot, axis=-1, keepdims=True)    # [B, HB, 1]
                cs = jnp.sum(sj * onehot, axis=-1, keepdims=True)    # [1, HB, 1]
                head_p = cp if head_p is None else head_p * cp
                head_s = cs if head_s is None else jnp.maximum(head_s, cs)

        if head_p is None:
            op_ref[...] = jnp.broadcast_to(tp, op_ref.shape).astype(op_ref.dtype)
            os_ref[...] = jnp.broadcast_to(ts, os_ref.shape).astype(os_ref.dtype)
        else:
            # 1 multiply + 1 max per output element, then one dense store.
            op_ref[...] = (head_p * tp).astype(op_ref.dtype)
            os_ref[...] = jnp.maximum(head_s, ts).astype(os_ref.dtype)

    return kernel


def max_module(*distrs, tail_cap=2048, block_rows=None, block_target_bytes=1 << 20):
    """JAX/Pallas equivalent of Max().forward(*distrs) with the default max_fn."""
    assert len(distrs) >= 1
    probs = [jnp.asarray(d.probs) for d in distrs]
    syms = [jnp.asarray(d.symbols).reshape(-1).astype(jnp.float32) for d in distrs]
    B = probs[0].shape[0]
    assert all(p.shape[0] == B for p in probs)
    out_dtype = jnp.result_type(*[p.dtype for p in probs])
    probs = [p.astype(out_dtype) for p in probs]
    sizes = [int(p.shape[1]) for p in probs]
    k = len(sizes)

    if k == 1:
        # Max over 1-tuples is the identity.
        return Distribution(probs[0], syms[0])

    flat_total = _prod(sizes)

    # ---- Head / tail split: tail = longest suffix (<= k-1 dists) whose joint
    # fits in `tail_cap`; its pattern is precomputed once (tiny, O(B*T)). -----
    tail_len, tprod = 1, sizes[-1]
    for j in range(k - 2, 0, -1):
        if tprod * sizes[j] > tail_cap:
            break
        tprod *= sizes[j]
        tail_len += 1
    m = k - tail_len
    T = tprod
    head_sizes = sizes[:m]
    head_total = _prod(head_sizes)
    assert head_total < 2**31, "head index would overflow int32"

    tail_p = probs[m]
    for p in probs[m + 1:]:
        tail_p = (tail_p[:, :, None] * p[:, None, :]).reshape(B, -1)
    tail_s = syms[m]
    for s in syms[m + 1:]:
        tail_s = jnp.maximum(tail_s[:, None], s[None, :]).reshape(-1)

    # Packed head inputs (single DMA descriptor each) + per-dist metadata.
    head_p_packed = jnp.concatenate(probs[:m], axis=1)          # [B, sum(n_head)]
    head_s_packed = jnp.concatenate(syms[:m]).reshape(1, -1)    # [1, sum(n_head)]
    head_meta, off = [], 0
    for j, n in enumerate(head_sizes):
        head_meta.append((off, n, _prod(head_sizes[j + 1:])))
        off += n
    head_meta = tuple(head_meta)
    sum_head = head_p_packed.shape[1]

    # ---- Block-row (sublane) tiling of the head axis. -----------------------
    head_pad8 = _round_up(head_total, 8)
    if block_rows is not None:
        HB = min(_round_up(block_rows, 8), head_pad8)
    else:
        HB = max(8, (block_target_bytes // (B * T * 4)) // 8 * 8)
        HB = min(HB, head_pad8)
        if head_pad8 > 8 and -(-head_pad8 // HB) < 2:
            # Keep >= 2 grid steps so both v7x TensorCores get work.
            HB = _round_up(-(-head_pad8 // 2), 8)
    padded_head = _round_up(head_total, HB)
    grid = (padded_head // HB,)

    kernel = _make_kernel(head_meta)

    out_p, out_s = pl.pallas_call(
        kernel,
        grid=grid,
        in_specs=[
            pl.BlockSpec((B, 1, sum_head), lambda c: (0, 0, 0)),
            pl.BlockSpec((1, 1, sum_head), lambda c: (0, 0, 0)),
            pl.BlockSpec((B, 1, T), lambda c: (0, 0, 0)),
            pl.BlockSpec((1, 1, T), lambda c: (0, 0, 0)),
        ],
        out_specs=(
            pl.BlockSpec((B, HB, T), lambda c: (0, c, 0)),
            pl.BlockSpec((1, HB, T), lambda c: (0, c, 0)),
        ),
        out_shape=(
            jax.ShapeDtypeStruct((B, padded_head, T), out_dtype),
            jax.ShapeDtypeStruct((1, padded_head, T), jnp.float32),
        ),
        compiler_params=pltpu.CompilerParams(
            dimension_semantics=("parallel",),       # independent output blocks
            vmem_limit_bytes=32 * 1024 * 1024,       # safe on v5e/v6e/v7x
        ),
    )(
        head_p_packed[:, None, :],
        head_s_packed[:, None, :],
        tail_p[:, None, :],
        tail_s[None, None, :],
    )

    probs_out = out_p[:, :head_total, :].reshape(B, flat_total)   # contiguous view
    syms_out = out_s[0, :head_total, :].reshape(flat_total)

    # TODO(synk): Distribution.map may merge duplicate symbols (docstring shows
    # deduped [4, 5]); dedup has data-dependent shape and no static Pallas
    # equivalent, so per-tuple outputs are kept.
    # TODO(synk): arbitrary Python max_fn over non-numeric symbols and Collate's
    # optional top-k sampling have no tensor equivalent; default numeric max only.
    return Distribution(probs_out, syms_out)


if __name__ == "__main__":
    key = jax.random.PRNGKey(0)

    def make_probs(k, b, n):
        return jax.nn.softmax(jax.random.normal(k, (b, n), dtype=jnp.float32), axis=-1)

    # ---------------- Case A: 3 distributions, basic path --------------------
    B, N1, N2, N3 = 2, 4, 8, 16
    k1, k2, k3, k4, k5, k6, k7 = jax.random.split(key, 7)
    p1, p2, p3 = make_probs(k1, B, N1), make_probs(k2, B, N2), make_probs(k3, B, N3)
    s1 = jnp.arange(1, N1 + 1, dtype=jnp.float32)
    s2 = jnp.arange(1, N2 + 1, dtype=jnp.float32) * 0.5
    s3 = jnp.arange(1, N3 + 1, dtype=jnp.float32) * 0.25

    out = max_module(Distribution(p1, s1), Distribution(p2, s2), Distribution(p3, s3))
    jax.block_until_ready(out.probs)
    jax.block_until_ready(out.symbols)

    ref_p = jnp.einsum("bi,bj,bk->bijk", p1, p2, p3).reshape(B, -1)
    ref_s = jnp.maximum(
        jnp.maximum(s1[:, None, None], s2[None, :, None]), s3[None, None, :]
    ).reshape(-1)
    assert out.probs.shape == (B, N1 * N2 * N3)
    assert out.symbols.shape == (N1 * N2 * N3,)
    assert jnp.allclose(out.probs, ref_p, atol=1e-6, rtol=1e-5)
    assert jnp.allclose(out.symbols, ref_s, atol=1e-6, rtol=1e-5)

    # ------- Case B: 4 distributions, multi-step grid + scalar-pick path -----
    M1, M2, M3, M4 = 3, 16, 8, 16
    q1, q2, q3, q4 = (make_probs(k4, B, M1), make_probs(k5, B, M2),
                      make_probs(k6, B, M3), make_probs(k7, B, M4))
    t1 = jnp.linspace(-1.0, 1.0, M1, dtype=jnp.float32)
    t2 = jnp.linspace(0.0, 3.0, M2, dtype=jnp.float32)
    t3 = jnp.linspace(-2.0, 2.0, M3, dtype=jnp.float32)
    t4 = jnp.linspace(0.5, 2.5, M4, dtype=jnp.float32)

    out2 = max_module(Distribution(q1, t1), Distribution(q2, t2),
                      Distribution(q3, t3), Distribution(q4, t4),
                      tail_cap=512, block_rows=16)
    jax.block_until_ready(out2.probs)
    jax.block_until_ready(out2.symbols)

    ref_p2 = jnp.einsum("bi,bj,bk,bl->bijkl", q1, q2, q3, q4).reshape(B, -1)
    ref_s2 = jnp.maximum(
        jnp.maximum(jnp.maximum(t1[:, None, None, None], t2[None, :, None, None]),
                    t3[None, None, :, None]),
        t4[None, None, None, :],
    ).reshape(-1)
    assert out2.probs.shape == (B, M1 * M2 * M3 * M4)
    assert out2.symbols.shape == (M1 * M2 * M3 * M4,)
    assert jnp.allclose(out2.probs, ref_p2, atol=1e-6, rtol=1e-5)
    assert jnp.allclose(out2.symbols, ref_s2, atol=1e-6, rtol=1e-5)

    print("KERNEL_OK")
</pallas_src>

<mosaic_0001>
module attributes {stable_mosaic.version = 11 : i64} {
  func.func @kernel(%arg0: i32, %arg1: memref<2x1x4xf32, #tpu.memory_space<vmem>>, %arg2: memref<1x1x4xf32, #tpu.memory_space<vmem>>, %arg3: memref<2x1x128xf32, #tpu.memory_space<vmem>>, %arg4: memref<1x1x128xf32, #tpu.memory_space<vmem>>, %arg5: memref<2x8x128xf32, #tpu.memory_space<vmem>>, %arg6: memref<1x8x128xf32, #tpu.memory_space<vmem>>) attributes {dimension_semantics = [#tpu.dimension_semantics<parallel>], iteration_bounds = array<i64: 1>, scalar_prefetch = 0 : i64, scratch_operands = 0 : i64, tpu.core_type = #tpu.core_type<tc>, window_params = [{pipeline_mode = #tpu.pipeline_mode<synchronous>, transform_indices = @transform_0, window_bounds = array<i64: 2, 1, 4>}, {pipeline_mode = #tpu.pipeline_mode<synchronous>, transform_indices = @transform_1, window_bounds = array<i64: 1, 1, 4>}, {pipeline_mode = #tpu.pipeline_mode<synchronous>, transform_indices = @transform_2, window_bounds = array<i64: 2, 1, 128>}, {pipeline_mode = #tpu.pipeline_mode<synchronous>, transform_indices = @transform_3, window_bounds = array<i64: 1, 1, 128>}, {transform_indices = @transform_4, window_bounds = array<i64: 2, 8, 128>}, {transform_indices = @transform_5, window_bounds = array<i64: 1, 8, 128>}]} {
    %c8_i32 = arith.constant 8 : i32
    %0 = arith.muli %arg0, %c8_i32 : i32
    %1 = tpu.assume_multiple %0, 8 : i32
    %c0 = arith.constant 0 : index
    %c0_0 = arith.constant 0 : index
    %c0_1 = arith.constant 0 : index
    %2 = vector.load %arg3[%c0, %c0_0, %c0_1] : memref<2x1x128xf32, #tpu.memory_space<vmem>>, vector<2x1x128xf32>
    %c0_2 = arith.constant 0 : index
    %c0_3 = arith.constant 0 : index
    %c0_4 = arith.constant 0 : index
    %3 = vector.load %arg4[%c0_2, %c0_3, %c0_4] : memref<1x1x128xf32, #tpu.memory_space<vmem>>, vector<1x1x128xf32>
    %c0_5 = arith.constant 0 : index
    %c0_6 = arith.constant 0 : index
    %c0_7 = arith.constant 0 : index
    %4 = vector.load %arg1[%c0_5, %c0_6, %c0_7] : memref<2x1x4xf32, #tpu.memory_space<vmem>>, vector<2x1x4xf32>
    %c0_8 = arith.constant 0 : index
    %c0_9 = arith.constant 0 : index
    %c0_10 = arith.constant 0 : index
    %5 = vector.load %arg2[%c0_8, %c0_9, %c0_10] : memref<1x1x4xf32, #tpu.memory_space<vmem>>, vector<1x1x4xf32>
    %6 = tpu.iota {dimensions = array<i32: 1>} : vector<1x8x4xi32>
    %7 = vector.broadcast %1 : i32 to vector<1x8x4xi32>
    %8 = arith.addi %6, %7 : vector<1x8x4xi32>
    %9 = tpu.iota {dimensions = array<i32: 2>} : vector<1x8x4xi32>
    %c4_i32 = arith.constant 4 : i32
    %c0_i32 = arith.constant 0 : i32
    %10 = arith.cmpi eq, %c4_i32, %c0_i32 : i32
    %c1_i32 = arith.constant 1 : i32
    %11 = arith.select %10, %c1_i32, %c4_i32 : i32
    %12 = vector.broadcast %11 : i32 to vector<1x8x4xi32>
    %13 = arith.remsi %8, %12 : vector<1x8x4xi32>
    %c0_i32_11 = arith.constant 0 : i32
    %14 = vector.broadcast %c0_i32_11 : i32 to vector<1x8x4xi32>
    %15 = arith.cmpi ne, %13, %14 : vector<1x8x4xi32>
    %c0_i32_12 = arith.constant 0 : i32
    %16 = vector.broadcast %c0_i32_12 : i32 to vector<1x8x4xi32>
    %17 = arith.cmpi slt, %13, %16 : vector<1x8x4xi32>
    %c0_i32_13 = arith.constant 0 : i32
    %18 = arith.cmpi slt, %11, %c0_i32_13 : i32
    %19 = vector.broadcast %18 : i1 to vector<1x8x4xi1>
    %20 = vector.broadcast %19 : vector<1x8x4xi1> to vector<1x8x4xi1>
    %21 = arith.xori %17, %20 : vector<1x8x4xi1>
    %22 = arith.andi %21, %15 : vector<1x8x4xi1>
    %23 = vector.broadcast %11 : i32 to vector<1x8x4xi32>
    %24 = arith.addi %13, %23 : vector<1x8x4xi32>
    %25 = arith.select %22, %24, %13 : vector<1x8x4xi1>, vector<1x8x4xi32>
    %26 = arith.cmpi eq, %9, %25 : vector<1x8x4xi32>
    %27 = arith.extui %26 : vector<1x8x4xi1> to vector<1x8x4xi32>
    %28 = arith.sitofp %27 : vector<1x8x4xi32> to vector<1x8x4xf32>
    %29 = vector.broadcast %4 : vector<2x1x4xf32> to vector<2x8x4xf32>
    %30 = vector.broadcast %28 : vector<1x8x4xf32> to vector<2x8x4xf32>
    %31 = arith.mulf %29, %30 : vector<2x8x4xf32>
    %cst = arith.constant dense<0.000000e+00> : vector<2x8xf32>
    %32 = vector.multi_reduction <add>, %31, %cst [2] : vector<2x8x4xf32> to vector<2x8xf32>
    %33 = vector.shape_cast %32 : vector<2x8xf32> to vector<2x8x1xf32>
    %34 = vector.broadcast %5 : vector<1x1x4xf32> to vector<1x8x4xf32>
    %35 = arith.mulf %34, %28 : vector<1x8x4xf32>
    %cst_14 = arith.constant dense<0.000000e+00> : vector<1x8xf32>
    %36 = vector.multi_reduction <add>, %35, %cst_14 [2] : vector<1x8x4xf32> to vector<1x8xf32>
    %37 = vector.shape_cast %36 : vector<1x8xf32> to vector<1x8x1xf32>
    %38 = vector.broadcast %33 : vector<2x8x1xf32> to vector<2x8x128xf32>
    %39 = vector.broadcast %2 : vector<2x1x128xf32> to vector<2x8x128xf32>
    %40 = arith.mulf %38, %39 : vector<2x8x128xf32>
    %c0_15 = arith.constant 0 : index
    %c0_16 = arith.constant 0 : index
    %c0_17 = arith.constant 0 : index
    %41 = vector.load %arg5[%c0_15, %c0_16, %c0_17] : memref<2x8x128xf32, #tpu.memory_space<vmem>>, vector<2x8x128xf32>
    tpu.vector_store %arg5[%c0_15, %c0_16, %c0_17], %40 {strides = array<i32>} : memref<2x8x128xf32, #tpu.memory_space<vmem>>, vector<2x8x128xf32>,
    %42 = vector.broadcast %37 : vector<1x8x1xf32> to vector<1x8x128xf32>
    %43 = vector.broadcast %3 : vector<1x1x128xf32> to vector<1x8x128xf32>
    %44 = arith.maximumf %42, %43 : vector<1x8x128xf32>
    %c0_18 = arith.constant 0 : index
    %c0_19 = arith.constant 0 : index
    %c0_20 = arith.constant 0 : index
    %45 = vector.load %arg6[%c0_18, %c0_19, %c0_20] : memref<1x8x128xf32, #tpu.memory_space<vmem>>, vector<1x8x128xf32>
    tpu.vector_store %arg6[%c0_18, %c0_19, %c0_20], %44 {strides = array<i32>} : memref<1x8x128xf32, #tpu.memory_space<vmem>>, vector<1x8x128xf32>,
    return
  }
  func.func @transform_0(%arg0: i32) -> (i32, i32, i32) {
    %c0_i32 = arith.constant 0 : i32
    %c0_i32_0 = arith.constant 0 : i32
    %c0_i32_1 = arith.constant 0 : i32
    %c0_i32_2 = arith.constant 0 : i32
    return %c0_i32, %c0_i32_0, %c0_i32_1 : i32, i32, i32
  }
  func.func @transform_1(%arg0: i32) -> (i32, i32, i32) {
    %c0_i32 = arith.constant 0 : i32
    %c0_i32_0 = arith.constant 0 : i32
    %c0_i32_1 = arith.constant 0 : i32
    %c0_i32_2 = arith.constant 0 : i32
    return %c0_i32, %c0_i32_0, %c0_i32_1 : i32, i32, i32
  }
  func.func @transform_2(%arg0: i32) -> (i32, i32, i32) {
    %c0_i32 = arith.constant 0 : i32
    %c0_i32_0 = arith.constant 0 : i32
    %c0_i32_1 = arith.constant 0 : i32
    %c0_i32_2 = arith.constant 0 : i32
    return %c0_i32, %c0_i32_0, %c0_i32_1 : i32, i32, i32
  }
  func.func @transform_3(%arg0: i32) -> (i32, i32, i32) {
    %c0_i32 = arith.constant 0 : i32
    %c0_i32_0 = arith.constant 0 : i32
    %c0_i32_1 = arith.constant 0 : i32
    %c0_i32_2 = arith.constant 0 : i32
    return %c0_i32, %c0_i32_0, %c0_i32_1 : i32, i32, i32
  }
  func.func @transform_4(%arg0: i32) -> (i32, i32, i32) {
    %c0_i32 = arith.constant 0 : i32
    %c0_i32_0 = arith.constant 0 : i32
    %c0_i32_1 = arith.constant 0 : i32
    return %c0_i32, %arg0, %c0_i32_0 : i32, i32, i32
  }
  func.func @transform_5(%arg0: i32) -> (i32, i32, i32) {
    %c0_i32 = arith.constant 0 : i32
    %c0_i32_0 = arith.constant 0 : i32
    %c0_i32_1 = arith.constant 0 : i32
    return %c0_i32, %arg0, %c0_i32_0 : i32, i32, i32
  }
}

</mosaic_0001>

<bundles_post_ra>
// kernel: tpu_custom_call.1
= control target key start
LH: loop header
LB: loop body
LE: loop exit
PB: predicated region body
PF: predicated region fallthrough
CT: control target
= control target key end

     0   :  { %11 = vsyncpa [#allocation3], 0  ;;  %s289_s0 = inlined_call_operand.hbm [shape: f32[2,1,4], index: 0, kind: input, shape index: {}]   ;;  %s290_s1 = inlined_call_operand.vmem [shape: f32[1,1,4], index: 1, kind: input, shape index: {}]   ;;  %s291_s2 = inlined_call_operand.vmem [shape: f32[2,1,128], index: 2, kind: input, shape index: {}]   ;;  %s292_s3 = inlined_call_operand.vmem [shape: f32[1,1,128], index: 3, kind: input, shape index: {}]   ;;  %s293_s4 = inlined_call_operand.hbm [shape: f32[2,8,128], index: 4, kind: output, shape index: {0}]   ;;  %s294_s5 = inlined_call_operand.hbm [shape: f32[1,8,128], index: 5, kind: output, shape index: {1}]  }
   0x1   :  { %12 = vsyncpa [#allocation4], 0 }
   0x2   :  { %13 = vsyncpa [#allocation7], 0  ;;  %s230_s18 = smov [#allocation2]  }
   0x3   :  { %s19_s19 = sshll.u32 %s230_s18, 4  ;;  %s20_s19 = int_to_ptr.vmem [resolvable:$true] %s19_s19 }
   0x4   :  { %s172_s20 = scalar_lea.vmem %s20_s19, 32  ;;  %p177_p1 = scmp.lt.s32.totalorder %s20_s19, %s20_s19 }
   0x5   :  { %p173_p0 = scmp.ne.s32.totalorder %s20_s19, %s172_s20  ;;  %p178_p2 = scmp.lt.s32.totalorder %s172_s20, %s172_s20 }
   0x7   :  { %p179_p3 = por %p178_p2, %p177_p1 }
   0x9   :  { %p180_p4 = pnand %p179_p3, %p173_p0 }
   0xb   :  { %183 = shalt.err (!%p180_p4)
}
   0xc   :  { %s231_s21 = smov 16   ;;  %s232_s22 = smov 1  }
   0xd   :  { %25 = dma.hbm_to_vmem [thread:$0]  %s289_s0, 32, %s20_s19, [#allocation3], %s231_s21, %s231_s21, %s232_s22  }
   0xe   :  { %224 = dma.done.wait [#allocation3], 32  }
   0xf   :  { %225 = vsyncadd [#allocation3], 4294967264  ;;  %v42_v0 = vlaneseq  ;;  %v150_v4 = vld [vmem:[#allocation2] ss:$0 sm:$0xff]  ;;  %v233_v5 = vmov 0.0   ;;  %vm77_vm1 = vcmask 31744  }
  0x10   :  { %v152_v7 = vld [vmem:[%s290_s1] ss:$0 sm:$0xff]  ;;  %v151_v10 = vld [vmem:[#allocation2 + $0x1] ss:$0 sm:$0xff]  ;;  %s234_s30 = smov [#allocation6]   ;;  %s235_s6 = smov [#allocation5]  }
  0x11   :  { %v43_v1 = vshrl.u32 %v42_v0, 7  ;;  %v47_v2 = vand.u32 127, %v42_v0  ;;  %v153_v15 = vld [vmem:[%s291_s2] ss:$0 sm:$0xff]  ;;  %s136_s1 = sshll.u32 %s234_s30, 4  ;;  %s123_s7 = sshll.u32 %s235_s6, 4  ;;  %s137_s1 = int_to_ptr.vmem [resolvable:$true] %s136_s1  ;;  %s124_s7 = int_to_ptr.vmem [resolvable:$true] %s123_s7 }
  0x12   :  { %v155_v16 = vld [vmem:[%s292_s3] ss:$0 sm:$0xff]  ;;  %v154_v21 = vld [vmem:[%s291_s2 + $0x1] ss:$0 sm:$0xff]  ;;  %s184_s10 = scalar_lea.vmem %s137_s1, 128  ;;  %p189_p6 = scmp.lt.s32.totalorder %s137_s1, %s137_s1 }
  0x13   :  { %v52_v3 = vand.u32 3, %v43_v1  ;;  %p185_p5 = scmp.ne.s32.totalorder %s137_s1, %s184_s10  ;;  %p190_p7 = scmp.lt.s32.totalorder %s184_s10, %s184_s10 }
  0x15   :  { %vm60_vm0 = vcmp.eq.s32.totalorder %v47_v2, %v52_v3  ;;  %p191_p8 = por %p190_p7, %p189_p6 }
  0x16   :  { %v149_v6 = vsel %vm60_vm0, 1.0, %v233_v5 }
  0x17   :  { %v75_v8 = vmul.f32 %v150_v4, %v149_v6  ;;  %v90_v9 = vmul.f32 %v152_v7, %v149_v6  ;;  %v76_v11 = vmul.f32 %v151_v10, %v149_v6  ;;  %p192_p9 = pnand %p191_p8, %p185_p5 }
  0x19   :  { %v78_v12 = vsel %vm77_vm1, %v75_v8, 0.0  ;;  %v91_v13 = vsel %vm77_vm1, %v90_v9, 0.0  ;;  %v81_v14 = vsel %vm77_vm1, %v76_v11, 0.0 }
  0x1a   :  { %79 = vadd.xlane.f32.xlu0 %v78_v12  ;;  %92 = vadd.xlane.f32.xlu1 %v91_v13 }
  0x1e   :  { %82 = vadd.xlane.f32.xlu0 %v81_v14 }
  0xa3   :  { %v80_v17 = vpop.xlane.xlu0 %79  ;;  %v93_v18 = vpop.xlane.xlu1 %92 }
  0xa4   :  { %v106_v19 = vmul.f32 %v153_v15, %v80_v17  ;;  %v116_v20 = vmax.f32 %v93_v18, %v155_v16 }
  0xa6   :  { %108 = vst [vmem:[#allocation5] sm:$0xff] %v106_v19  ;;  %117 = vst [vmem:[#allocation6] sm:$0xff] %v116_v20 }
  0xa7   :  { %v83_v22 = vpop.xlane.xlu0 %82 }
  0xa8   :  { %195 = shalt.err (!%p192_p9)
}
  0xa9   :  { %139 = dma.vmem_to_hbm [thread:$0]  %s137_s1, 128, %s294_s5, [#allocation7]   ;;  %v107_v23 = vmul.f32 %v154_v21, %v83_v22 }
  0xaa   :  { %s204_s12 = scalar_lea.vmem %s124_s7, 256  ;;  %p209_p11 = scmp.lt.s32.totalorder %s124_s7, %s124_s7 }
  0xab   :  { %109 = vst [vmem:[#allocation5 + $0x8] sm:$0xff] %v107_v23  ;;  %p205_p10 = scmp.ne.s32.totalorder %s124_s7, %s204_s12  ;;  %p210_p12 = scmp.lt.s32.totalorder %s204_s12, %s204_s12 }
  0xad   :  { %p211_p13 = por %p210_p12, %p209_p11 }
  0xaf   :  { %p212_p0 = pnand %p211_p13, %p205_p10 }
  0xb1   :  { %215 = shalt.err (!%p212_p0)
}
  0xb2   :  { %s236_s2 = smov 128   ;;  %s237_s13 = smov 8  }
  0xb3   :  { %129 = dma.vmem_to_hbm [thread:$0]  %s124_s7, 256, %s293_s4, [#allocation4], %s236_s2, %s236_s2, %s237_s13  }
  0xb4   :  { %226 = dma.done.wait [#allocation4], 256  }
  0xb5   :  { %227 = vsyncadd [#allocation4], 4294967040 }
  0xb6   :  { %228 = dma.done.wait [#allocation7], 128  }
  0xb7   :  { %229 = vsyncadd [#allocation7], 4294967168 }
  0xb8   :  { %146 = vsyncpa [#allocation3], 1 }
  0xb9   :  { %147 = vsyncpa [#allocation4], 1 }
  0xba   :  { %148 = vsyncpa [#allocation7], 1 }

</bundles_post_ra>
